<compile_context>
chip_gen: v6e
topology: v6e:2x2x1
jax: 0.10.0
libtpu: 0.0.40
codegen_flags: <defaults>
</compile_context>

<pallas_src>
import functools

import jax
import jax.numpy as jnp
from jax.experimental import pallas as pl
from jax.experimental.pallas import tpu as pltpu


def _round_up(x, m):
    return (x + m - 1) // m * m


def _pad_cast(a, shape, dtype):
    """Cast to dtype and zero-pad up to `shape`; no-op copy when already aligned."""
    a = jnp.asarray(a, dtype)
    if a.shape == tuple(shape):
        return a
    out = jnp.zeros(shape, dtype)
    return out.at[tuple(slice(0, s) for s in a.shape)].set(a)


def _physical_vmem_bytes():
    try:
        return int(pltpu.get_tpu_info().vmem_capacity_bytes)
    except Exception:
        pass
    try:
        kind = jax.devices()[0].device_kind.lower()
        if "v7" in kind:
            return 64 * 1024 * 1024
    except Exception:
        pass
    return 128 * 1024 * 1024


# ----------------------------------------------------------------------------
# Kernels
# ----------------------------------------------------------------------------
def _lora_kernel_fused(x_ref, wt_ref, b_ref, a_ref, bm_ref, o_ref, acc_ref, xa_ref):
    # grid = (M//tm, N//tn, K//tk); K (reduction) is innermost.
    j = pl.program_id(1)
    k = pl.program_id(2)
    nk = pl.num_programs(2)
    tk = x_ref.shape[1]

    @pl.when(k == 0)
    def _():
        # Fold the bias into the accumulator init (removes an epilogue VPU add
        # and an extra VMEM load).
        acc_ref[...] = jnp.broadcast_to(b_ref[...], acc_ref.shape)

    @pl.when((j == 0) & (k == 0))
    def _():
        xa_ref[...] = jnp.zeros_like(xa_ref)

    x = x_ref[...]

    # Base GEMM: accumulate x @ W^T in f32 on the MXU.
    acc_ref[...] += jnp.dot(x, wt_ref[...], preferred_element_type=jnp.float32)

    # x @ A is N-invariant: accumulate it only on the first N tile of each M tile
    # (over all K steps) and reuse it for every other N tile. A is VMEM-resident
    # (constant block index -> fetched once), sliced by the K step here.
    @pl.when(j == 0)
    def _():
        a_blk = a_ref[pl.ds(pl.multiple_of(k * tk, tk), tk), :]
        xa_ref[...] += jnp.dot(x, a_blk, preferred_element_type=jnp.float32)

    # Epilogue on the last K step: add the (already alpha/rank-scaled) LoRA term.
    @pl.when(k == nk - 1)
    def _():
        lora = jnp.dot(xa_ref[...].astype(bm_ref.dtype), bm_ref[...],
                       preferred_element_type=jnp.float32)
        o_ref[...] = (acc_ref[...] + lora).astype(o_ref.dtype)


def _lora_kernel_xa_input(x_ref, wt_ref, b_ref, xa_ref, bm_ref, o_ref, acc_ref):
    # Variant with x@A precomputed in the wrapper: no cross-j dependency, so both
    # M and N grid axes can be "parallel" (v7x megacore with small M).
    k = pl.program_id(2)
    nk = pl.num_programs(2)

    @pl.when(k == 0)
    def _():
        acc_ref[...] = jnp.broadcast_to(b_ref[...], acc_ref.shape)

    acc_ref[...] += jnp.dot(x_ref[...], wt_ref[...],
                            preferred_element_type=jnp.float32)

    @pl.when(k == nk - 1)
    def _():
        lora = jnp.dot(xa_ref[...], bm_ref[...], preferred_element_type=jnp.float32)
        o_ref[...] = (acc_ref[...] + lora).astype(o_ref.dtype)


# ----------------------------------------------------------------------------
# Wrapper: one-time weight preparation + per-call apply
# ----------------------------------------------------------------------------
def prepare_lora_weights(W, b, A, Bm, *, alpha=32, rank=4,
                         tn=512, tk=512, compute_dtype=jnp.bfloat16):
    """Pad / cast / transpose the frozen + LoRA weights once (reused every call)."""
    out_f, in_f = W.shape
    assert A.shape == (in_f, rank) and Bm.shape == (rank, out_f)

    # Lane-dense (multiple-of-128) N and K; clamp tiles for tiny problems.
    tn = min(tn, _round_up(out_f, 128))
    tk = min(tk, _round_up(in_f, 128))
    N = _round_up(out_f, tn)
    K = _round_up(in_f, tk)
    # Pad rank to a full lane group: sublane-full B block, lane-dense A / xA blocks,
    # and full MXU contraction depth in the rank-K matmuls. Extra MXU work is only
    # ~rank_pad/N of the base GEMM (and only on the first N tile).
    rank_pad = _round_up(rank, 128)
    scale = float(alpha) / float(rank)

    wt = _pad_cast(W.T, (K, N), compute_dtype)                    # (K, N)
    ap = _pad_cast(A, (K, rank_pad), compute_dtype)               # (K, rank_pad)
    # Fold (alpha / rank) into B once (no per-tile scaling in the kernel).
    bp = _pad_cast(jnp.asarray(Bm, jnp.float32) * scale, (rank_pad, N), compute_dtype)
    if b is None:
        bias = jnp.zeros((1, N), jnp.float32)
    else:
        bias = _pad_cast(jnp.asarray(b).reshape(1, -1), (1, N), jnp.float32)

    return dict(wt=wt, ap=ap, bp=bp, bias=bias,
                tn=tn, tk=tk, N=N, K=K, rank_pad=rank_pad,
                in_f=in_f, out_f=out_f, compute_dtype=compute_dtype)


def lora_linear_apply(params, x, *, tm=512, out_dtype=None, split_xa=False):
    """out = x @ W^T + b + (alpha/rank) * ((x @ A) @ B), fused on TPU."""
    in_f, out_f = params["in_f"], params["out_f"]
    tk, tn, K, N = params["tk"], params["tn"], params["K"], params["N"]
    rank_pad = params["rank_pad"]
    cdt = params["compute_dtype"]
    out_dtype = x.dtype if out_dtype is None else out_dtype

    lead_shape = x.shape[:-1]
    x2 = x.reshape(-1, in_f)
    M0 = x2.shape[0]
    tm = min(tm, _round_up(M0, 16))
    M = _round_up(M0, tm)

    xp = _pad_cast(x2, (M, K), cdt)
    grid = (M // tm, N // tn, K // tk)

    # VMEM budget: double-buffered input/output tiles + f32 accumulators + resident
    # LoRA operands, with ~1.5x headroom, capped below the chip's physical VMEM
    # (64 MiB on v7x, 128 MiB on v5e/v6e) minus Mosaic-internal headroom.
    isz = jnp.dtype(cdt).itemsize
    osz = jnp.dtype(out_dtype).itemsize
    vmem_est = (2 * (tm * tk + tk * tn + rank_pad * tn) * isz
                + 2 * tn * 4 + 2 * tm * tn * osz + tm * tn * 4)
    if split_xa:
        vmem_est += 2 * tm * rank_pad * isz
    else:
        vmem_est += 2 * K * rank_pad * isz + tm * rank_pad * 4
    vmem_limit = int(min(max(int(1.5 * vmem_est), 32 * 1024 * 1024),
                         _physical_vmem_bytes() - 8 * 1024 * 1024))

    x_spec = pl.BlockSpec((tm, tk), lambda i, j, k: (i, k))
    wt_spec = pl.BlockSpec((tk, tn), lambda i, j, k: (k, j))
    b_spec = pl.BlockSpec((1, tn), lambda i, j, k: (0, j))
    bm_spec = pl.BlockSpec((rank_pad, tn), lambda i, j, k: (0, j))
    out_spec = pl.BlockSpec((tm, tn), lambda i, j, k: (i, j))
    out_shape = jax.ShapeDtypeStruct((M, N), out_dtype)
    acc_scratch = pltpu.VMEM((tm, tn), jnp.float32)

    if split_xa:
        # Tiny O(M*K*rank) GEMM outside the kernel; removes the j==0 dependency so
        # the N axis is also safely "parallel" (v7x: both cores busy at small M).
        xa = jnp.dot(xp, params["ap"], preferred_element_type=jnp.float32).astype(cdt)
        out = pl.pallas_call(
            _lora_kernel_xa_input,
            out_shape=out_shape,
            grid=grid,
            in_specs=[x_spec, wt_spec, b_spec,
                      pl.BlockSpec((tm, rank_pad), lambda i, j, k: (i, 0)),
                      bm_spec],
            out_specs=out_spec,
            scratch_shapes=[acc_scratch],
            compiler_params=pltpu.CompilerParams(
                dimension_semantics=("parallel", "parallel", "arbitrary"),
                vmem_limit_bytes=vmem_limit),
        )(xp, params["wt"], params["bias"], xa, params["bp"])
    else:
        out = pl.pallas_call(
            _lora_kernel_fused,
            out_shape=out_shape,
            grid=grid,
            in_specs=[x_spec, wt_spec, b_spec,
                      # Full-resident lora_A: constant block index -> DMA'd once.
                      pl.BlockSpec((K, rank_pad), lambda i, j, k: (0, 0)),
                      bm_spec],
            out_specs=out_spec,
            scratch_shapes=[acc_scratch,
                            pltpu.VMEM((tm, rank_pad), jnp.float32)],  # x@A (N-invariant)
            compiler_params=pltpu.CompilerParams(
                # N must stay sequential per core: the x@A scratch filled at j==0 is
                # reused by later N tiles (use split_xa=True for N-parallel).
                dimension_semantics=("parallel", "arbitrary", "arbitrary"),
                vmem_limit_bytes=vmem_limit),
        )(xp, params["wt"], params["bias"], params["ap"], params["bp"])

    return out[:M0, :out_f].reshape(*lead_shape, out_f)


def lora_linear(x, W, b, A, Bm, *, alpha=32, rank=4, tm=512, tn=512, tk=512,
                compute_dtype=jnp.bfloat16, out_dtype=None, split_xa=False):
    """One-shot convenience wrapper (prefer prepare_lora_weights + apply in a loop)."""
    params = prepare_lora_weights(W, b, A, Bm, alpha=alpha, rank=rank,
                                  tn=tn, tk=tk, compute_dtype=compute_dtype)
    return lora_linear_apply(params, x, tm=tm, out_dtype=out_dtype, split_xa=split_xa)


if __name__ == "__main__":
    key = jax.random.PRNGKey(0)
    k_x, k_w, k_b, k_a, k_bn = jax.random.split(key, 5)

    batch, seq = 2, 8
    in_features, out_features = 32, 64
    rank, alpha = 4, 32

    # Deterministic synthetic "module parameters".
    x = jax.random.normal(k_x, (batch, seq, in_features), dtype=jnp.float32)
    W = jax.random.normal(k_w, (out_features, in_features), dtype=jnp.float32) * 0.05
    b = jax.random.normal(k_b, (out_features,), dtype=jnp.float32) * 0.01
    lora_A = jax.random.normal(k_a, (in_features, rank), dtype=jnp.float32) * 0.02
    lora_B = jnp.zeros((rank, out_features), dtype=jnp.float32)          # torch.zeros init
    lora_B_nz = jax.random.normal(k_bn, (rank, out_features), jnp.float32) * 0.02

    def ref(x, W, b, A, Bm):
        base = jnp.einsum("bsi,oi->bso", x, W) + b
        lora = jnp.einsum("bsi,ir,ro->bso", x, A, Bm)
        return base + lora * (alpha / rank)

    # --- f32 compute path: tight numerical check (fused and split-xA variants) ---
    p32 = prepare_lora_weights(W, b, lora_A, lora_B_nz, alpha=alpha, rank=rank,
                               compute_dtype=jnp.float32)
    out_f32 = jax.block_until_ready(lora_linear_apply(p32, x))
    assert out_f32.shape == (batch, seq, out_features)
    assert jnp.allclose(out_f32, ref(x, W, b, lora_A, lora_B_nz), atol=1e-4)

    out_f32_xa = jax.block_until_ready(lora_linear_apply(p32, x, split_xa=True))
    assert jnp.allclose(out_f32_xa, ref(x, W, b, lora_A, lora_B_nz), atol=1e-4)

    # --- bf16 compute path (MXU-native), weights prepared once and reused --------
    pbf_nz = prepare_lora_weights(W, b, lora_A, lora_B_nz, alpha=alpha, rank=rank)
    pbf_z = prepare_lora_weights(W, b, lora_A, lora_B, alpha=alpha, rank=rank)

    out_bf16_nz = jax.block_until_ready(lora_linear_apply(pbf_nz, x))
    out_bf16_z = jax.block_until_ready(lora_linear_apply(pbf_z, x))
    assert out_bf16_nz.shape == (batch, seq, out_features)
    assert jnp.allclose(out_bf16_nz, ref(x, W, b, lora_A, lora_B_nz),
                        atol=3e-2, rtol=3e-2)
    assert jnp.allclose(out_bf16_z, ref(x, W, b, lora_A, lora_B),
                        atol=3e-2, rtol=3e-2)

    # bf16 output (halves writeback traffic when the model runs in bf16).
    out_bf16_o = jax.block_until_ready(
        lora_linear_apply(pbf_nz, x, out_dtype=jnp.bfloat16))
    assert jnp.allclose(out_bf16_o.astype(jnp.float32),
                        ref(x, W, b, lora_A, lora_B_nz), atol=5e-2, rtol=5e-2)

    print("KERNEL_OK")
</pallas_src>

<mosaic_0001>
module attributes {stable_mosaic.version = 11 : i64} {
  func.func @_lora_kernel_fused(%arg0: i32, %arg1: i32, %arg2: i32, %arg3: memref<16x128xf32, #tpu.memory_space<vmem>>, %arg4: memref<128x128xf32, #tpu.memory_space<vmem>>, %arg5: memref<1x128xf32, #tpu.memory_space<vmem>>, %arg6: memref<128x128xf32, #tpu.memory_space<vmem>>, %arg7: memref<128x128xf32, #tpu.memory_space<vmem>>, %arg8: memref<16x128xf32, #tpu.memory_space<vmem>>, %arg9: memref<16x128xf32, #tpu.memory_space<vmem>>, %arg10: memref<16x128xf32, #tpu.memory_space<vmem>>) attributes {dimension_semantics = [#tpu.dimension_semantics<parallel>, #tpu.dimension_semantics<arbitrary>, #tpu.dimension_semantics<arbitrary>], iteration_bounds = array<i64: 1, 1, 1>, scalar_prefetch = 0 : i64, scratch_operands = 2 : i64, tpu.core_type = #tpu.core_type<tc>, window_params = [{transform_indices = @transform_0, window_bounds = array<i64: 16, 128>}, {transform_indices = @transform_1, window_bounds = array<i64: 128, 128>}, {transform_indices = @transform_2, window_bounds = array<i64: 1, 128>}, {pipeline_mode = #tpu.pipeline_mode<synchronous>, transform_indices = @transform_3, window_bounds = array<i64: 128, 128>}, {transform_indices = @transform_4, window_bounds = array<i64: 128, 128>}, {transform_indices = @transform_5, window_bounds = array<i64: 16, 128>}]} {
    %c0_i32 = arith.constant 0 : i32
    %0 = arith.cmpi eq, %arg2, %c0_i32 : i32
    %1 = arith.extui %0 : i1 to i32
    %c0_i32_0 = arith.constant 0 : i32
    %2 = arith.cmpi ne, %1, %c0_i32_0 : i32
    scf.if %2 {
      %c0_15 = arith.constant 0 : index
      %c0_16 = arith.constant 0 : index
      %20 = vector.load %arg5[%c0_15, %c0_16] : memref<1x128xf32, #tpu.memory_space<vmem>>, vector<1x128xf32>
      %21 = vector.shape_cast %20 : vector<1x128xf32> to vector<1x128xf32>
      %22 = vector.broadcast %21 : vector<1x128xf32> to vector<16x128xf32>
      %c0_17 = arith.constant 0 : index
      %c0_18 = arith.constant 0 : index
      %23 = vector.load %arg9[%c0_17, %c0_18] : memref<16x128xf32, #tpu.memory_space<vmem>>, vector<16x128xf32>
      tpu.vector_store %arg9[%c0_17, %c0_18], %22 {strides = array<i32>} : memref<16x128xf32, #tpu.memory_space<vmem>>, vector<16x128xf32>,
    } else {
    }
    %c0_i32_1 = arith.constant 0 : i32
    %3 = arith.cmpi eq, %arg1, %c0_i32_1 : i32
    %c0_i32_2 = arith.constant 0 : i32
    %4 = arith.cmpi eq, %arg2, %c0_i32_2 : i32
    %5 = arith.andi %3, %4 : i1
    %6 = arith.extui %5 : i1 to i32
    %c0_i32_3 = arith.constant 0 : i32
    %7 = arith.cmpi ne, %6, %c0_i32_3 : i32
    scf.if %7 {
      %cst_15 = arith.constant 0.000000e+00 : f32
      %20 = vector.broadcast %cst_15 : f32 to vector<16x128xf32>
      %c0_16 = arith.constant 0 : index
      %c0_17 = arith.constant 0 : index
      %21 = vector.load %arg10[%c0_16, %c0_17] : memref<16x128xf32, #tpu.memory_space<vmem>>, vector<16x128xf32>
      tpu.vector_store %arg10[%c0_16, %c0_17], %20 {strides = array<i32>} : memref<16x128xf32, #tpu.memory_space<vmem>>, vector<16x128xf32>,
    } else {
    }
    %c0 = arith.constant 0 : index
    %c0_4 = arith.constant 0 : index
    %8 = vector.load %arg3[%c0, %c0_4] : memref<16x128xf32, #tpu.memory_space<vmem>>, vector<16x128xf32>
    %c0_5 = arith.constant 0 : index
    %c0_6 = arith.constant 0 : index
    %9 = vector.load %arg9[%c0_5, %c0_6] : memref<16x128xf32, #tpu.memory_space<vmem>>, vector<16x128xf32>
    %c0_7 = arith.constant 0 : index
    %c0_8 = arith.constant 0 : index
    %10 = vector.load %arg4[%c0_7, %c0_8] : memref<128x128xf32, #tpu.memory_space<vmem>>, vector<128x128xf32>
    %cst = arith.constant dense<0.000000e+00> : vector<16x128xf32>
    %11 = tpu.matmul %8, %10, %cst {dimension_numbers = #tpu.dot_dimension_numbers<[1], [0], [0], [1], [0, 0, 1, 1], [], []>} : vector<16x128xf32>, vector<128x128xf32>, vector<16x128xf32> -> vector<16x128xf32>
    %12 = arith.addf %9, %11 : vector<16x128xf32>
    %c0_9 = arith.constant 0 : index
    %c0_10 = arith.constant 0 : index
    %13 = vector.load %arg9[%c0_9, %c0_10] : memref<16x128xf32, #tpu.memory_space<vmem>>, vector<16x128xf32>
    tpu.vector_store %arg9[%c0_9, %c0_10], %12 {strides = array<i32>} : memref<16x128xf32, #tpu.memory_space<vmem>>, vector<16x128xf32>,
    %c0_i32_11 = arith.constant 0 : i32
    %14 = arith.cmpi eq, %arg1, %c0_i32_11 : i32
    %15 = arith.extui %14 : i1 to i32
    %c0_i32_12 = arith.constant 0 : i32
    %16 = arith.cmpi ne, %15, %c0_i32_12 : i32
    scf.if %16 {
      %c128_i32 = arith.constant 128 : i32
      %20 = arith.muli %arg2, %c128_i32 : i32
      %21 = tpu.assume_multiple %20, 128 : i32
      %22 = arith.index_cast %21 : i32 to index
      %c0_15 = arith.constant 0 : index
      %23 = vector.load %arg6[%22, %c0_15] : memref<128x128xf32, #tpu.memory_space<vmem>>, vector<128x128xf32>
      %c0_16 = arith.constant 0 : index
      %c0_17 = arith.constant 0 : index
      %24 = vector.load %arg10[%c0_16, %c0_17] : memref<16x128xf32, #tpu.memory_space<vmem>>, vector<16x128xf32>
      %cst_18 = arith.constant dense<0.000000e+00> : vector<16x128xf32>
      %25 = tpu.matmul %8, %23, %cst_18 {dimension_numbers = #tpu.dot_dimension_numbers<[1], [0], [0], [1], [0, 0, 1, 1], [], []>} : vector<16x128xf32>, vector<128x128xf32>, vector<16x128xf32> -> vector<16x128xf32>
      %26 = arith.addf %24, %25 : vector<16x128xf32>
      %c0_19 = arith.constant 0 : index
      %c0_20 = arith.constant 0 : index
      %27 = vector.load %arg10[%c0_19, %c0_20] : memref<16x128xf32, #tpu.memory_space<vmem>>, vector<16x128xf32>
      tpu.vector_store %arg10[%c0_19, %c0_20], %26 {strides = array<i32>} : memref<16x128xf32, #tpu.memory_space<vmem>>, vector<16x128xf32>,
    } else {
    }
    %c0_i32_13 = arith.constant 0 : i32
    %17 = arith.cmpi eq, %arg2, %c0_i32_13 : i32
    %18 = arith.extui %17 : i1 to i32
    %c0_i32_14 = arith.constant 0 : i32
    %19 = arith.cmpi ne, %18, %c0_i32_14 : i32
    scf.if %19 {
      %c0_15 = arith.constant 0 : index
      %c0_16 = arith.constant 0 : index
      %20 = vector.load %arg10[%c0_15, %c0_16] : memref<16x128xf32, #tpu.memory_space<vmem>>, vector<16x128xf32>
      %c0_17 = arith.constant 0 : index
      %c0_18 = arith.constant 0 : index
      %21 = vector.load %arg7[%c0_17, %c0_18] : memref<128x128xf32, #tpu.memory_space<vmem>>, vector<128x128xf32>
      %cst_19 = arith.constant dense<0.000000e+00> : vector<16x128xf32>
      %22 = tpu.matmul %20, %21, %cst_19 {dimension_numbers = #tpu.dot_dimension_numbers<[1], [0], [0], [1], [0, 0, 1, 1], [], []>} : vector<16x128xf32>, vector<128x128xf32>, vector<16x128xf32> -> vector<16x128xf32>
      %c0_20 = arith.constant 0 : index
      %c0_21 = arith.constant 0 : index
      %23 = vector.load %arg9[%c0_20, %c0_21] : memref<16x128xf32, #tpu.memory_space<vmem>>, vector<16x128xf32>
      %24 = arith.addf %23, %22 : vector<16x128xf32>
      %c0_22 = arith.constant 0 : index
      %c0_23 = arith.constant 0 : index
      %25 = vector.load %arg8[%c0_22, %c0_23] : memref<16x128xf32, #tpu.memory_space<vmem>>, vector<16x128xf32>
      tpu.vector_store %arg8[%c0_22, %c0_23], %24 {strides = array<i32>} : memref<16x128xf32, #tpu.memory_space<vmem>>, vector<16x128xf32>,
    } else {
    }
    return
  }
  func.func @transform_0(%arg0: i32, %arg1: i32, %arg2: i32) -> (i32, i32) {
    %c0_i32 = arith.constant 0 : i32
    return %arg0, %arg2 : i32, i32
  }
  func.func @transform_1(%arg0: i32, %arg1: i32, %arg2: i32) -> (i32, i32) {
    %c0_i32 = arith.constant 0 : i32
    return %arg2, %arg1 : i32, i32
  }
  func.func @transform_2(%arg0: i32, %arg1: i32, %arg2: i32) -> (i32, i32) {
    %c0_i32 = arith.constant 0 : i32
    %c0_i32_0 = arith.constant 0 : i32
    return %c0_i32, %arg1 : i32, i32
  }
  func.func @transform_3(%arg0: i32, %arg1: i32, %arg2: i32) -> (i32, i32) {
    %c0_i32 = arith.constant 0 : i32
    %c0_i32_0 = arith.constant 0 : i32
    %c0_i32_1 = arith.constant 0 : i32
    return %c0_i32, %c0_i32_0 : i32, i32
  }
  func.func @transform_4(%arg0: i32, %arg1: i32, %arg2: i32) -> (i32, i32) {
    %c0_i32 = arith.constant 0 : i32
    %c0_i32_0 = arith.constant 0 : i32
    return %c0_i32, %arg1 : i32, i32
  }
  func.func @transform_5(%arg0: i32, %arg1: i32, %arg2: i32) -> (i32, i32) {
    %c0_i32 = arith.constant 0 : i32
    return %arg0, %arg1 : i32, i32
  }
}

</mosaic_0001>

<bundles_post_ra>
// kernel: tpu_custom_call.1
= control target key start
LH: loop header
LB: loop body
LE: loop exit
PB: predicated region body
PF: predicated region fallthrough
CT: control target
= control target key end

     0   :  { %10 = vsyncpa [#allocation5], 0  ;;  %s767_s0 = inlined_call_operand.hbm [shape: f32[16,128], index: 0, kind: input, shape index: {}]   ;;  %s768_s1 = inlined_call_operand.hbm [shape: f32[128,128], index: 1, kind: input, shape index: {}]   ;;  %s769_s2 = inlined_call_operand.vmem [shape: f32[1,128], index: 2, kind: input, shape index: {}]   ;;  %s770_s3 = inlined_call_operand.hbm [shape: f32[128,128], index: 3, kind: input, shape index: {}]   ;;  %s771_s4 = inlined_call_operand.hbm [shape: f32[128,128], index: 4, kind: input, shape index: {}]   ;;  %s772_s5 = inlined_call_operand.hbm [shape: f32[16,128], index: 5, kind: output, shape index: {}]  }
   0x1   :  { %11 = vsyncpa [#allocation8], 0 }
   0x2   :  { %12 = vsyncpa [#allocation11], 0 }
   0x3   :  { %13 = vsyncpa [#allocation6], 0  ;;  %s693_s18 = smov [#allocation7]   ;;  %s694_s20 = smov [#allocation4]  }
   0x4   :  { %s31_s19 = sshll.u32 %s693_s18, 4  ;;  %s19_s21 = sshll.u32 %s694_s20, 4  ;;  %s32_s19 = int_to_ptr.vmem [resolvable:$true] %s31_s19  ;;  %s20_s21 = int_to_ptr.vmem [resolvable:$true] %s19_s21 }
   0x5   :  { %s593_s22 = scalar_lea.vmem %s32_s19, 2048  ;;  %p598_p1 = scmp.lt.s32.totalorder %s32_s19, %s32_s19 }
   0x6   :  { %p594_p0 = scmp.ne.s32.totalorder %s32_s19, %s593_s22  ;;  %p599_p2 = scmp.lt.s32.totalorder %s593_s22, %s593_s22 }
   0x8   :  { %p600_p3 = por %p599_p2, %p598_p1 }
   0xa   :  { %p601_p4 = pnand %p600_p3, %p594_p0 }
   0xc   :  { %604 = shalt.err (!%p601_p4)
}
   0xd   :  { %s695_s23 = smov 128   ;;  %s696_s24 = smov 8  }
   0xe   :  { %37 = dma.hbm_to_vmem [thread:$0]  %s768_s1, 2048, %s32_s19, [#allocation8], %s695_s23, %s695_s23, %s696_s24  }
   0xf   :  { %s613_s27 = scalar_lea.vmem %s20_s21, 256  ;;  %p618_p6 = scmp.lt.s32.totalorder %s20_s21, %s20_s21 }
  0x10   :  { %p614_p5 = scmp.ne.s32.totalorder %s20_s21, %s613_s27  ;;  %p619_p7 = scmp.lt.s32.totalorder %s613_s27, %s613_s27 }
  0x12   :  { %p620_p8 = por %p619_p7, %p618_p6 }
  0x14   :  { %p621_p9 = pnand %p620_p8, %p614_p5 }
  0x16   :  { %624 = shalt.err (!%p621_p9)
}
  0x17   :  { %25 = dma.hbm_to_vmem [thread:$0]  %s767_s0, 256, %s20_s21, [#allocation5], %s695_s23, %s695_s23, %s696_s24  }
  0x18   :  { %s697_s30 = smov [#allocation9]   ;;  %s698_s7 = smov [#allocation10]  }
  0x19   :  { %s45_s6 = sshll.u32 %s697_s30, 4  ;;  %s57_s8 = sshll.u32 %s698_s7, 4  ;;  %s46_s6 = int_to_ptr.vmem [resolvable:$true] %s45_s6  ;;  %s58_s8 = int_to_ptr.vmem [resolvable:$true] %s57_s8 }
  0x1a   :  { %s633_s1 = scalar_lea.vmem %s46_s6, 2048  ;;  %p638_p11 = scmp.lt.s32.totalorder %s46_s6, %s46_s6 }
  0x1b   :  { %p634_p10 = scmp.ne.s32.totalorder %s46_s6, %s633_s1  ;;  %p639_p12 = scmp.lt.s32.totalorder %s633_s1, %s633_s1 }
  0x1d   :  { %p640_p13 = por %p639_p12, %p638_p11 }
  0x1f   :  { %p641_p0 = pnand %p640_p13, %p634_p10 }
  0x21   :  { %644 = shalt.err (!%p641_p0)
}
  0x22   :  { %51 = dma.hbm_to_vmem [thread:$0]  %s770_s3, 2048, %s46_s6, [#allocation8], %s695_s23, %s695_s23, %s696_s24  }
  0x23   :  { %s653_s0 = scalar_lea.vmem %s58_s8, 2048  ;;  %p658_p2 = scmp.lt.s32.totalorder %s58_s8, %s58_s8 }
  0x24   :  { %p654_p1 = scmp.ne.s32.totalorder %s58_s8, %s653_s0  ;;  %p659_p3 = scmp.lt.s32.totalorder %s653_s0, %s653_s0 }
  0x26   :  { %p660_p4 = por %p659_p3, %p658_p2 }
  0x28   :  { %p661_p5 = pnand %p660_p4, %p654_p1 }
  0x2a   :  { %664 = shalt.err (!%p661_p5)
}
  0x2b   :  { %63 = dma.hbm_to_vmem [thread:$0]  %s771_s4, 2048, %s58_s8, [#allocation11], %s695_s23, %s695_s23, %s696_s24  }
  0x2c   :  { %685 = dma.done.wait [#allocation5], 256  }
  0x2d   :  { %686 = vsyncadd [#allocation5], 4294967040 }
  0x2e   :  { %687 = dma.done.wait [#allocation8], 4096  }
  0x2f   :  { %688 = vsyncadd [#allocation8], 4294963200 }
  0x30   :  { %689 = dma.done.wait [#allocation11], 2048  }
  0x31   :  { %690 = vsyncadd [#allocation11], 4294965248  ;;  %v215_v0 = vld [vmem:[#allocation9 + $0x78] sm:$0xff]  ;;  %v214_v1 = vld [vmem:[#allocation9 + $0x70] sm:$0xff]  ;;  %s699_s13 = smov [#allocation12]  }
  0x32   :  { %508 = vmatprep.subr.mxu1 %v215_v0  ;;  %v213_v2 = vld [vmem:[#allocation9 + $0x68] sm:$0xff]  ;;  %v212_v3 = vld [vmem:[#allocation9 + $0x60] sm:$0xff]  ;;  %v754_v4 = vld [vmem:[#allocation4] sm:$0xff]  ;;  %s404_s14 = sshll.u32 %s699_s13, 4  ;;  %s405_s14 = int_to_ptr.vmem [resolvable:$true] %s404_s14 }
  0x33   :  { %509 = vmatpush3.msra.mxu1 %v215_v0  ;;  %v211_v5 = vld [vmem:[#allocation9 + $0x58] sm:$0xff]  ;;  %540 = vmatprep.mubr.f32.mxu1 %v754_v4  ;;  %v114_v7 = vld [vmem:[#allocation7 + $0x70] sm:$0xff]  ;;  %v113_v9 = vld [vmem:[#allocation7 + $0x68] sm:$0xff]  ;;  %s665_s15 = scalar_lea.vmem %s405_s14, 256  ;;  %p670_p7 = scmp.lt.s32.totalorder %s405_s14, %s405_s14 }
  0x34   :  { %510 = vmatprep.subr.mxu1 %v214_v1  ;;  %v115_v6 = vld [vmem:[#allocation7 + $0x78] sm:$0xff]  ;;  %v210_v8 = vld [vmem:[#allocation9 + $0x50] sm:$0xff]  ;;  %v209_v10 = vld [vmem:[#allocation9 + $0x48] sm:$0xff]  ;;  %505 = vmatprep.mubr.f32.mxu0 %v754_v4  ;;  %p666_p6 = scmp.ne.s32.totalorder %s405_s14, %s665_s15  ;;  %p671_p8 = scmp.lt.s32.totalorder %s665_s15, %s665_s15 }
  0x35   :  { %511 = vmatpush3.msra.mxu1 %v214_v1  ;;  %473 = vmatprep.subr.mxu0 %v115_v6  ;;  %v112_v11 = vld [vmem:[#allocation7 + $0x60] sm:$0xff]  ;;  %v111_v13 = vld [vmem:[#allocation7 + $0x58] sm:$0xff]  ;;  %v110_v15 = vld [vmem:[#allocation7 + $0x50] sm:$0xff] }
  0x36   :  { %512 = vmatprep.subr.mxu1 %v213_v2  ;;  %474 = vmatpush3.msra.mxu0 %v115_v6  ;;  %v208_v12 = vld [vmem:[#allocation9 + $0x40] sm:$0xff]  ;;  %v207_v14 = vld [vmem:[#allocation9 + $0x38] sm:$0xff]  ;;  %v206_v16 = vld [vmem:[#allocation9 + $0x30] sm:$0xff]  ;;  %p672_p9 = por %p671_p8, %p670_p7 }
  0x37   :  { %513 = vmatpush3.msra.mxu1 %v213_v2  ;;  %475 = vmatprep.subr.mxu0 %v114_v7  ;;  %v109_v17 = vld [vmem:[#allocation7 + $0x48] sm:$0xff]  ;;  %v108_v19 = vld [vmem:[#allocation7 + $0x40] sm:$0xff]  ;;  %v107_v21 = vld [vmem:[#allocation7 + $0x38] sm:$0xff] }
  0x38   :  { %514 = vmatprep.subr.mxu1 %v212_v3  ;;  %476 = vmatpush3.msra.mxu0 %v114_v7  ;;  %v205_v18 = vld [vmem:[#allocation9 + $0x28] sm:$0xff]  ;;  %v204_v20 = vld [vmem:[#allocation9 + $0x20] sm:$0xff]  ;;  %v203_v22 = vld [vmem:[#allocation9 + $0x18] sm:$0xff]  ;;  %p673_p10 = pnand %p672_p9, %p666_p6 }
  0x39   :  { %515 = vmatpush3.msra.mxu1 %v212_v3  ;;  %477 = vmatprep.subr.mxu0 %v113_v9  ;;  %v106_v23 = vld [vmem:[#allocation7 + $0x30] sm:$0xff]  ;;  %v105_v25 = vld [vmem:[#allocation7 + $0x28] sm:$0xff]  ;;  %v104_v27 = vld [vmem:[#allocation7 + $0x20] sm:$0xff] }
  0x3a   :  { %516 = vmatprep.subr.mxu1 %v211_v5  ;;  %478 = vmatpush3.msra.mxu0 %v113_v9  ;;  %v202_v24 = vld [vmem:[#allocation9 + $0x10] sm:$0xff]  ;;  %v201_v26 = vld [vmem:[#allocation9 + $0x8] sm:$0xff]  ;;  %v200_v28 = vld [vmem:[#allocation9] sm:$0xff] }
  0x3b   :  { %517 = vmatpush3.msra.mxu1 %v211_v5  ;;  %479 = vmatprep.subr.mxu0 %v112_v11  ;;  %v103_v29 = vld [vmem:[#allocation7 + $0x18] sm:$0xff]  ;;  %v102_v31 = vld [vmem:[#allocation7 + $0x10] sm:$0xff]  ;;  %v101_v32 = vld [vmem:[#allocation7 + $0x8] sm:$0xff] }
  0x3c   :  { %518 = vmatprep.subr.mxu1 %v210_v8  ;;  %480 = vmatpush3.msra.mxu0 %v112_v11  ;;  %v97_v30 = vld [vmem:[#allocation4 + $0x8] sm:$0xff]  ;;  %v100_v33 = vld [vmem:[#allocation7] sm:$0xff]  ;;  %v316_v35 = vld [vmem:[#allocation10 + $0x70] sm:$0xff] }
  0x3d   :  { %519 = vmatpush3.msra.mxu1 %v210_v8  ;;  %481 = vmatprep.subr.mxu0 %v111_v13  ;;  %v317_v34 = vld [vmem:[#allocation10 + $0x78] sm:$0xff]  ;;  %v315_v36 = vld [vmem:[#allocation10 + $0x68] sm:$0xff]  ;;  %v314_v37 = vld [vmem:[#allocation10 + $0x60] sm:$0xff] }
  0x3e   :  { %520 = vmatprep.subr.mxu1 %v209_v10  ;;  %482 = vmatpush3.msra.mxu0 %v111_v13  ;;  %v313_v38 = vld [vmem:[#allocation10 + $0x58] sm:$0xff]  ;;  %v312_v39 = vld [vmem:[#allocation10 + $0x50] sm:$0xff]  ;;  %v311_v40 = vld [vmem:[#allocation10 + $0x48] sm:$0xff] }
  0x3f   :  { %521 = vmatpush3.msra.mxu1 %v209_v10  ;;  %483 = vmatprep.subr.mxu0 %v110_v15  ;;  %v310_v41 = vld [vmem:[#allocation10 + $0x40] sm:$0xff]  ;;  %v309_v42 = vld [vmem:[#allocation10 + $0x38] sm:$0xff]  ;;  %v308_v43 = vld [vmem:[#allocation10 + $0x30] sm:$0xff] }
  0x40   :  { %522 = vmatprep.subr.mxu1 %v208_v12  ;;  %484 = vmatpush3.msra.mxu0 %v110_v15  ;;  %v307_v44 = vld [vmem:[#allocation10 + $0x28] sm:$0xff]  ;;  %v306_v45 = vld [vmem:[#allocation10 + $0x20] sm:$0xff]  ;;  %v305_v46 = vld [vmem:[#allocation10 + $0x18] sm:$0xff] }
  0x41   :  { %523 = vmatpush3.msra.mxu1 %v208_v12  ;;  %485 = vmatprep.subr.mxu0 %v109_v17  ;;  %v304_v47 = vld [vmem:[#allocation10 + $0x10] sm:$0xff]  ;;  %v303_v48 = vld [vmem:[#allocation10 + $0x8] sm:$0xff]  ;;  %v302_v49 = vld [vmem:[#allocation10] sm:$0xff] }
  0x42   :  { %524 = vmatprep.subr.mxu1 %v207_v14  ;;  %486 = vmatpush3.msra.mxu0 %v109_v17  ;;  %v418_v53 = vld [vmem:[%s769_s2] ss:$0 sm:$0xff] }
  0x43   :  { %525 = vmatpush3.msra.mxu1 %v207_v14  ;;  %487 = vmatprep.subr.mxu0 %v108_v19 }
  0x44   :  { %526 = vmatprep.subr.mxu1 %v206_v16  ;;  %488 = vmatpush3.msra.mxu0 %v108_v19 }
  0x45   :  { %527 = vmatpush3.msra.mxu1 %v206_v16  ;;  %489 = vmatprep.subr.mxu0 %v107_v21 }
  0x46   :  { %528 = vmatprep.subr.mxu1 %v205_v18  ;;  %490 = vmatpush3.msra.mxu0 %v107_v21 }
  0x47   :  { %529 = vmatpush3.msra.mxu1 %v205_v18  ;;  %491 = vmatprep.subr.mxu0 %v106_v23 }
  0x48   :  { %530 = vmatprep.subr.mxu1 %v204_v20  ;;  %492 = vmatpush3.msra.mxu0 %v106_v23 }
  0x49   :  { %531 = vmatpush3.msra.mxu1 %v204_v20  ;;  %493 = vmatprep.subr.mxu0 %v105_v25 }
  0x4a   :  { %532 = vmatprep.subr.mxu1 %v203_v22  ;;  %494 = vmatpush3.msra.mxu0 %v105_v25 }
  0x4b   :  { %533 = vmatpush3.msra.mxu1 %v203_v22  ;;  %495 = vmatprep.subr.mxu0 %v104_v27 }
  0x4c   :  { %534 = vmatprep.subr.mxu1 %v202_v24  ;;  %496 = vmatpush3.msra.mxu0 %v104_v27 }
  0x4d   :  { %535 = vmatpush3.msra.mxu1 %v202_v24  ;;  %497 = vmatprep.subr.mxu0 %v103_v29 }
  0x4e   :  { %536 = vmatprep.subr.mxu1 %v201_v26  ;;  %498 = vmatpush3.msra.mxu0 %v103_v29 }
  0x4f   :  { %537 = vmatpush3.msra.mxu1 %v201_v26  ;;  %499 = vmatprep.subr.mxu0 %v102_v31 }
  0x50   :  { %538 = vmatprep.subr.mxu1 %v200_v28  ;;  %500 = vmatpush3.msra.mxu0 %v102_v31 }
  0x51   :  { %539 = vmatpush3.msra.mxu1 %v200_v28  ;;  %501 = vmatprep.subr.mxu0 %v101_v32 }
  0x52   :  { %541 = vmatmul.mubr.f32.vlgmr.msra.gmra.mxu1 %v97_v30  ;;  %502 = vmatpush3.msra.mxu0 %v101_v32 }
  0x53   :  { %503 = vmatprep.subr.mxu0 %v100_v33 }
  0x54   :  { %504 = vmatpush3.msra.mxu0 %v100_v33 }
  0x55   :  { %506 = vmatmul.mubr.f32.vlgmr.msra.gmra.mxu0 %v97_v30  ;;  %543 = vmatprep.subr.mxu0 %v317_v34 }
  0x56   :  { %544 = vmatpush3.msra.mxu0 %v317_v34 }
  0x57   :  { %545 = vmatprep.subr.mxu0 %v316_v35 }
  0x58   :  { %546 = vmatpush3.msra.mxu0 %v316_v35 }
  0x59   :  { %547 = vmatprep.subr.mxu0 %v315_v36 }
  0x5a   :  { %548 = vmatpush3.msra.mxu0 %v315_v36 }
  0x5b   :  { %549 = vmatprep.subr.mxu0 %v314_v37 }
  0x5c   :  { %550 = vmatpush3.msra.mxu0 %v314_v37 }
  0x5d   :  { %551 = vmatprep.subr.mxu0 %v313_v38 }
  0x5e   :  { %552 = vmatpush3.msra.mxu0 %v313_v38 }
  0x5f   :  { %553 = vmatprep.subr.mxu0 %v312_v39 }
  0x60   :  { %554 = vmatpush3.msra.mxu0 %v312_v39 }
  0x61   :  { %555 = vmatprep.subr.mxu0 %v311_v40 }
  0x62   :  { %556 = vmatpush3.msra.mxu0 %v311_v40 }
  0x63   :  { %557 = vmatprep.subr.mxu0 %v310_v41 }
  0x64   :  { %558 = vmatpush3.msra.mxu0 %v310_v41 }
  0x65   :  { %559 = vmatprep.subr.mxu0 %v309_v42 }
  0x66   :  { %560 = vmatpush3.msra.mxu0 %v309_v42 }
  0x67   :  { %561 = vmatprep.subr.mxu0 %v308_v43 }
  0x68   :  { %562 = vmatpush3.msra.mxu0 %v308_v43 }
  0x69   :  { %563 = vmatprep.subr.mxu0 %v307_v44 }
  0x6a   :  { %564 = vmatpush3.msra.mxu0 %v307_v44 }
  0x6b   :  { %565 = vmatprep.subr.mxu0 %v306_v45 }
  0x6c   :  { %566 = vmatpush3.msra.mxu0 %v306_v45 }
  0x6d   :  { %567 = vmatprep.subr.mxu0 %v305_v46 }
  0x6e   :  { %568 = vmatpush3.msra.mxu0 %v305_v46 }
  0x6f   :  { %569 = vmatprep.subr.mxu0 %v304_v47 }
  0x70   :  { %570 = vmatpush3.msra.mxu0 %v304_v47 }
  0x71   :  { %571 = vmatprep.subr.mxu0 %v303_v48 }
  0x72   :  { %572 = vmatpush3.msra.mxu0 %v303_v48 }
  0x73   :  { %573 = vmatprep.subr.mxu0 %v302_v49 }
  0x74   :  { %574 = vmatpush3.msra.mxu0 %v302_v49 }
 0x112   :  { %v542_v50 = vpop.f32.mrf.mxu1 }
 0x114   :  { %v284_v51 = vpop.f32.mrf.mxu1 }
 0x115   :  { %575 = vmatprep.mubr.f32.mxu0 %v284_v51  ;;  %v507_v52 = vpop.f32.mrf.mxu0 }
 0x116   :  { %576 = vmatmul.mubr.f32.vlgmr.msra.gmra.mxu0 %v542_v50  ;;  %v192_v55 = vadd.f32 %v507_v52, %v418_v53 }
 0x117   :  { %v182_v54 = vpop.f32.mrf.mxu0 }
 0x118   :  { %v191_v57 = vadd.f32 %v418_v53, %v182_v54 }
 0x1d6   :  { %v577_v56 = vpop.f32.mrf.mxu0 }
 0x1d7   :  { %v396_v58 = vadd.f32 %v577_v56, %v192_v55 }
 0x1d8   :  { %v384_v59 = vpop.f32.mrf.mxu0 }
 0x1d9   :  { %398 = vst [vmem:[#allocation12 + $0x8] sm:$0xff] %v396_v58  ;;  %v395_v60 = vadd.f32 %v384_v59, %v191_v57 }
 0x1db   :  { %397 = vst [vmem:[#allocation12] sm:$0xff] %v395_v60 }
 0x1dc   :  { %676 = shalt.err (!%p673_p10)
}
 0x1dd   :  { %410 = dma.vmem_to_hbm [thread:$0]  %s405_s14, 256, %s772_s5, [#allocation6], %s695_s23, %s695_s23, %s696_s24  }
 0x1de   :  { %691 = dma.done.wait [#allocation6], 256  }
 0x1df   :  { %692 = vsyncadd [#allocation6], 4294967040 }
 0x1e0   :  { %414 = vsyncpa [#allocation5], 1 }
 0x1e1   :  { %415 = vsyncpa [#allocation8], 1 }
 0x1e2   :  { %416 = vsyncpa [#allocation11], 1 }
 0x1e3   :  { %417 = vsyncpa [#allocation6], 1 }

</bundles_post_ra>
